<compile_context>
chip_gen: v7x
topology: tpu7x:2x2x1
jax: 0.10.0
libtpu: 0.0.40
codegen_flags: <defaults>
</compile_context>

<pallas_src>
import numpy as np
import jax
import jax.numpy as jnp
from jax.experimental import pallas as pl
from jax.experimental.pallas import tpu as pltpu


# ----------------------------------------------------------------------------
# Fit-operator construction (padding folded in; entries exact in bf16)
# ----------------------------------------------------------------------------
def _fit_operators(H, W, radius, skip):
    offs = np.arange(-radius, radius + 1, skip)
    n = offs.size
    s2 = float(np.sum(offs.astype(np.float64) ** 2))
    sxx = n * s2                                     # == Syy (same offsets both axes)

    def toeplitz(N):
        mask = np.zeros((N, N), np.float32)          # out[i] = sum_d        x[i + d]
        dmat = np.zeros((N, N), np.float32)          # out[i] = sum_d d    * x[i + d]
        for i in range(N):
            for d in offs:
                j = i + d
                if 0 <= j < N:                       # out-of-range taps dropped (== zero pad)
                    mask[i, j] = 1.0
                    dmat[i, j] = float(d)
        return mask, dmat

    a_mask, a_d = toeplitz(H)                        # row operators (left-multiply)
    bm_t, bd_t = toeplitz(W)
    b_mask, b_d = bm_t.T, bd_t.T                     # column operators (right-multiply)

    a2 = np.concatenate([a_mask, a_d], axis=0)       # [2H, H]
    z = np.zeros((W, W), np.float32)
    bd2 = np.block([[b_d, z], [z, b_d]])             # [2W, 2W]
    bm2 = np.block([[b_mask, z], [z, b_mask]])       # [2W, 2W]

    # Entries are 0, 1.0 or small integers -> exact in bf16.
    return (jnp.asarray(a2, jnp.bfloat16),
            jnp.asarray(bd2, jnp.bfloat16),
            jnp.asarray(bm2, jnp.bfloat16),
            1.0 / sxx)


# ----------------------------------------------------------------------------
# Pallas kernel: 3 fused MXU matmuls -> lane-dense [H, 4W] = [exx|eyx|exy|eyy]
# ----------------------------------------------------------------------------
def strain_fit_pallas(disp0, *, radius=11, skip=2):
    """Windowed LSQ strain fit.

    disp0: [2, H, W] float32 (channel 0 = u, channel 1 = v).
    Returns a lane-dense [H, 4*W] float32 slab packed as [exx | eyx | exy | eyy].
    """
    _, H, W = disp0.shape
    a2, bd2, bm2, inv_s = _fit_operators(H, W, radius, skip)

    # Pack u and v side by side along lanes so one first-stage dot handles both.
    uv = jnp.transpose(disp0, (1, 0, 2)).reshape(H, 2 * W).astype(jnp.float32)

    def kernel(uv_ref, a2_ref, bd2_ref, bm2_ref, o_ref):
        uv_bf = uv_ref[...].astype(jnp.bfloat16)                  # [H, 2W] = [u | v]
        # Row-direction reductions for u and v in a single dot.
        r = jnp.dot(a2_ref[...], uv_bf,
                    preferred_element_type=jnp.float32)           # [2H, 2W]
        top = r[:H, :].astype(jnp.bfloat16)                       # [u_rm | v_rm]
        bot = r[H:, :].astype(jnp.bfloat16)                       # [u_rd | v_rd]
        # Column-direction reductions, two lane-packed dots.
        m1 = jnp.dot(top, bd2_ref[...],
                     preferred_element_type=jnp.float32)          # [exx | eyx]
        m2 = jnp.dot(bot, bm2_ref[...],
                     preferred_element_type=jnp.float32)          # [exy | eyy]
        o_ref[:, :2 * W] = m1 * inv_s
        o_ref[:, 2 * W:] = m2 * inv_s

    vmem = pl.BlockSpec(memory_space=pltpu.MemorySpace.VMEM)
    return pl.pallas_call(
        kernel,
        out_shape=jax.ShapeDtypeStruct((H, 4 * W), jnp.float32),
        in_specs=[vmem, vmem, vmem, vmem],
        out_specs=vmem,
    )(uv, a2, bd2, bm2)


# ----------------------------------------------------------------------------
# Deterministic init of the (unused for with_net=False) conv parameters,
# matching the shapes declared in DifferNet_FIT.__init__.
# ----------------------------------------------------------------------------
def init_net_params(key):
    def conv(k, cout, cin, kh, kw):
        k1, k2 = jax.random.split(k)
        scale = 1.0 / np.sqrt(cin * kh * kw)
        return (jax.random.uniform(k1, (cout, cin, kh, kw), jnp.float32, -scale, scale),
                jax.random.uniform(k2, (cout,), jnp.float32, -scale, scale))

    keys = jax.random.split(key, 7)
    return {
        "blur0": conv(keys[0], 16, 2, 5, 5),
        "blur1": conv(keys[1], 16, 16, 5, 5),     # stride 2
        "blur2": conv(keys[2], 16, 16, 5, 5),
        "blur3": conv(keys[3], 16, 16, 3, 3),
        # ConvTranspose2d weight layout is (in, out, kh, kw) in PyTorch
        "blur4_t": (jax.random.uniform(keys[4], (16, 8, 3, 3), jnp.float32, -1 / 12., 1 / 12.),
                    jax.random.uniform(jax.random.fold_in(keys[4], 1), (8,), jnp.float32,
                                       -1 / 12., 1 / 12.)),
        "blur5": conv(keys[5], 4, 8, 3, 3),
        "conv_layer": conv(keys[6], 4, 8, 3, 3),
    }


# ----------------------------------------------------------------------------
# Forward pass (semantics of DifferNet_FIT.forward, with_net=False default)
# ----------------------------------------------------------------------------
def differnet_fit_forward(displacements, params=None, *, radius=11, skip=2, with_net=False):
    B, _, H, W = displacements.shape

    if with_net:
        # TODO(synk): with_net=True branch (blur_layers conv stack + conv_layer)
        #             not implemented as Pallas kernels here.
        raise NotImplementedError("with_net=True branch is not implemented")

    # NOTE: the reference PyTorch code always fits displacements[0, 0]/[0, 1]
    # regardless of the batch index (a quirk) -- so one fit covers all b.
    # The *100 / /100 scaling in the reference cancels exactly (the fit is linear).
    packed = strain_fit_pallas(displacements[0].astype(jnp.float32),
                               radius=radius, skip=skip)            # [H, 4W]

    fields = packed.reshape(H, 4, W).transpose(1, 0, 2)             # (exx, eyx, exy, eyy)
    fields = fields[jnp.array([0, 2, 1, 3])]                        # (exx, exy, eyx, eyy)

    # torch.stack of B identical copies per field, then cat over fields -> [1, 4B, H, W]
    strain_raw = jnp.broadcast_to(fields[:, None], (4, B, H, W)).reshape(1, 4 * B, H, W)
    return strain_raw


# ----------------------------------------------------------------------------
# Independent numpy reference of the windowed LSQ plane-fit derivatives
# ----------------------------------------------------------------------------
def _strain_fit_numpy_ref(u, v, radius, skip):
    u = np.asarray(u, np.float64)
    v = np.asarray(v, np.float64)
    H, W = u.shape
    offs = np.arange(-radius, radius + 1, skip)
    sxx = offs.size * float(np.sum(offs.astype(np.float64) ** 2))
    up = np.pad(u, radius)
    vp = np.pad(v, radius)
    exx = np.zeros((H, W)); exy = np.zeros((H, W))
    eyx = np.zeros((H, W)); eyy = np.zeros((H, W))
    for di in offs:
        for dj in offs:
            wu = up[radius + di: radius + di + H, radius + dj: radius + dj + W]
            wv = vp[radius + di: radius + di + H, radius + dj: radius + dj + W]
            exx += dj * wu
            exy += di * wu
            eyx += dj * wv
            eyy += di * wv
    return exx / sxx, exy / sxx, eyx / sxx, eyy / sxx


if __name__ == "__main__":
    B, H, W = 2, 32, 32
    radius, skip = 11, 2

    key = jax.random.PRNGKey(0)
    displacements = 0.1 * jax.random.normal(key, (B, 2, H, W), dtype=jnp.float32)
    params = init_net_params(jax.random.PRNGKey(1))   # deterministic; unused for with_net=False

    out = differnet_fit_forward(displacements, params, radius=radius, skip=skip, with_net=False)
    out = jax.block_until_ready(out)
    assert out.shape == (1, 4 * B, H, W), out.shape

    # Sanity check kernel output against an independent float64 numpy reference.
    u0 = np.asarray(displacements[0, 0], np.float64)
    v0 = np.asarray(displacements[0, 1], np.float64)
    exx_r, exy_r, eyx_r, eyy_r = _strain_fit_numpy_ref(u0, v0, radius, skip)
    ref = np.stack([exx_r, exy_r, eyx_r, eyy_r], axis=0)            # [4, H, W]
    got = np.asarray(out[0, ::B])                                   # batch-0 channel of each field
    max_err = float(np.max(np.abs(got - ref)))
    assert np.allclose(got, ref, rtol=1e-2, atol=5e-5), max_err

    print("KERNEL_OK")
</pallas_src>

<mosaic_0001>
module attributes {stable_mosaic.version = 11 : i64} {
  func.func @kernel(%arg0: memref<32x64xf32, #tpu.memory_space<vmem>>, %arg1: memref<64x32xbf16, #tpu.memory_space<vmem>>, %arg2: memref<64x64xbf16, #tpu.memory_space<vmem>>, %arg3: memref<64x64xbf16, #tpu.memory_space<vmem>>, %arg4: memref<32x128xf32, #tpu.memory_space<vmem>>) attributes {dimension_semantics = [], scalar_prefetch = 0 : i64, scratch_operands = 0 : i64, tpu.core_type = #tpu.core_type<tc>} {
    %c0 = arith.constant 0 : index
    %c0_0 = arith.constant 0 : index
    %0 = vector.load %arg0[%c0, %c0_0] : memref<32x64xf32, #tpu.memory_space<vmem>>, vector<32x64xf32>
    %1 = arith.truncf %0 : vector<32x64xf32> to vector<32x64xbf16>
    %c0_1 = arith.constant 0 : index
    %c0_2 = arith.constant 0 : index
    %2 = vector.load %arg1[%c0_1, %c0_2] : memref<64x32xbf16, #tpu.memory_space<vmem>>, vector<64x32xbf16>
    %cst = arith.constant dense<0.000000e+00> : vector<64x64xf32>
    %3 = tpu.matmul %2, %1, %cst {dimension_numbers = #tpu.dot_dimension_numbers<[1], [0], [0], [1], [0, 0, 1, 1], [], []>} : vector<64x32xbf16>, vector<32x64xbf16>, vector<64x64xf32> -> vector<64x64xf32>
    %4 = vector.extract_strided_slice %3 {offsets = [0, 0], sizes = [32, 64], strides = [1, 1]} : vector<64x64xf32> to vector<32x64xf32>
    %5 = arith.truncf %4 : vector<32x64xf32> to vector<32x64xbf16>
    %6 = vector.extract_strided_slice %3 {offsets = [32, 0], sizes = [32, 64], strides = [1, 1]} : vector<64x64xf32> to vector<32x64xf32>
    %7 = arith.truncf %6 : vector<32x64xf32> to vector<32x64xbf16>
    %c0_3 = arith.constant 0 : index
    %c0_4 = arith.constant 0 : index
    %8 = vector.load %arg2[%c0_3, %c0_4] : memref<64x64xbf16, #tpu.memory_space<vmem>>, vector<64x64xbf16>
    %cst_5 = arith.constant dense<0.000000e+00> : vector<32x64xf32>
    %9 = tpu.matmul %5, %8, %cst_5 {dimension_numbers = #tpu.dot_dimension_numbers<[1], [0], [0], [1], [0, 0, 1, 1], [], []>} : vector<32x64xbf16>, vector<64x64xbf16>, vector<32x64xf32> -> vector<32x64xf32>
    %c0_6 = arith.constant 0 : index
    %c0_7 = arith.constant 0 : index
    %10 = vector.load %arg3[%c0_6, %c0_7] : memref<64x64xbf16, #tpu.memory_space<vmem>>, vector<64x64xbf16>
    %cst_8 = arith.constant dense<0.000000e+00> : vector<32x64xf32>
    %11 = tpu.matmul %7, %10, %cst_8 {dimension_numbers = #tpu.dot_dimension_numbers<[1], [0], [0], [1], [0, 0, 1, 1], [], []>} : vector<32x64xbf16>, vector<64x64xbf16>, vector<32x64xf32> -> vector<32x64xf32>
    %cst_9 = arith.constant 1.45687649E-4 : f32
    %12 = vector.broadcast %cst_9 : f32 to vector<32x64xf32>
    %13 = arith.mulf %9, %12 : vector<32x64xf32>
    %c0_10 = arith.constant 0 : index
    %c0_11 = arith.constant 0 : index
    %14 = vector.load %arg4[%c0_10, %c0_11] : memref<32x128xf32, #tpu.memory_space<vmem>>, vector<32x64xf32>
    tpu.vector_store %arg4[%c0_10, %c0_11], %13 {strides = array<i32>} : memref<32x128xf32, #tpu.memory_space<vmem>>, vector<32x64xf32>,
    %cst_12 = arith.constant 1.45687649E-4 : f32
    %15 = vector.broadcast %cst_12 : f32 to vector<32x64xf32>
    %16 = arith.mulf %11, %15 : vector<32x64xf32>
    %c0_13 = arith.constant 0 : index
    %c64 = arith.constant 64 : index
    %17 = vector.load %arg4[%c0_13, %c64] : memref<32x128xf32, #tpu.memory_space<vmem>>, vector<32x64xf32>
    tpu.vector_store %arg4[%c0_13, %c64], %16 {strides = array<i32>} : memref<32x128xf32, #tpu.memory_space<vmem>>, vector<32x64xf32>,
    return
  }
}

</mosaic_0001>

<bundles_post_ra>
// kernel: tpu_custom_call.1
= control target key start
LH: loop header
LB: loop body
LE: loop exit
PB: predicated region body
PF: predicated region fallthrough
CT: control target
= control target key end

     0   :  { %9 = vsyncpa [#allocation3], 0  ;;  %s666_s0 = inlined_call_operand.vmem [shape: f32[32,64], index: 0, kind: input, shape index: {}]   ;;  %s667_s1 = inlined_call_operand.vmem [shape: bf16[64,32], index: 1, kind: input, shape index: {}]   ;;  %s668_s2 = inlined_call_operand.hbm [shape: bf16[64,64], index: 2, kind: input, shape index: {}]   ;;  %s669_s3 = inlined_call_operand.hbm [shape: bf16[64,64], index: 3, kind: input, shape index: {}]   ;;  %s670_s4 = inlined_call_operand.hbm [shape: f32[32,128], index: 4, kind: output, shape index: {}]  }
   0x1   :  { %10 = vsyncpa [#allocation6], 0 }
   0x2   :  { %11 = vsyncpa [#allocation4], 0  ;;  %s554_s15 = smov [#allocation2]   ;;  %s482_s19 = scalar_lea.hbm %s668_s2, 512 }
   0x3   :  { %s21_s16 = sshll.u32 %s554_s15, 4  ;;  %p483_p0 = scmp.ne.s32.totalorder %s668_s2, %s482_s19  ;;  %s22_s16 = int_to_ptr.vmem [resolvable:$true] %s21_s16 }
   0x4   :  { %p486_p1 = scmp.lt.u32.totalorder %s482_s19, %s668_s2 }
   0x6   :  { %p488_p2 = pnand %p486_p1, %p483_p0 }
   0x8   :  { %491 = shalt.err (!%p488_p2)
}
   0x9   :  { %s492_s24 = scalar_lea.vmem %s22_s16, 512  ;;  %p497_p4 = scmp.lt.s32.totalorder %s22_s16, %s22_s16 }
   0xa   :  { %p493_p3 = scmp.ne.s32.totalorder %s22_s16, %s492_s24  ;;  %p498_p5 = scmp.lt.s32.totalorder %s492_s24, %s492_s24 }
   0xc   :  { %p499_p6 = por %p498_p5, %p497_p4 }
   0xe   :  { %p500_p7 = pnand %p499_p6, %p493_p3 }
  0x10   :  { %503 = shalt.err (!%p500_p7)
}
  0x11   :  { %s555_s25 = smov 64   ;;  %s556_s26 = smov 4  }
  0x12   :  { %27 = dma.hbm_to_vmem [thread:$0]  %s668_s2, 512, %s22_s16, [#allocation3], %s555_s25, %s555_s25, %s556_s26  }
  0x13   :  { %s557_s29 = smov [#allocation5]   ;;  %s504_s7 = scalar_lea.hbm %s669_s3, 512 }
  0x14   :  { %s33_s30 = sshll.u32 %s557_s29, 4  ;;  %p505_p8 = scmp.ne.s32.totalorder %s669_s3, %s504_s7  ;;  %s34_s30 = int_to_ptr.vmem [resolvable:$true] %s33_s30 }
  0x15   :  { %p508_p9 = scmp.lt.u32.totalorder %s504_s7, %s669_s3 }
  0x17   :  { %p510_p10 = pnand %p508_p9, %p505_p8 }
  0x19   :  { %513 = shalt.err (!%p510_p10)
}
  0x1a   :  { %s514_s12 = scalar_lea.vmem %s34_s30, 512  ;;  %p519_p12 = scmp.lt.s32.totalorder %s34_s30, %s34_s30 }
  0x1b   :  { %p515_p11 = scmp.ne.s32.totalorder %s34_s30, %s514_s12  ;;  %p520_p13 = scmp.lt.s32.totalorder %s514_s12, %s514_s12 }
  0x1d   :  { %p521_p0 = por %p520_p13, %p519_p12 }
  0x1f   :  { %p522_p1 = pnand %p521_p0, %p515_p11 }
  0x21   :  { %525 = shalt.err (!%p522_p1)
}
  0x22   :  { %39 = dma.hbm_to_vmem [thread:$0]  %s669_s3, 512, %s34_s30, [#allocation6], %s555_s25, %s555_s25, %s556_s26  }
  0x23   :  { %548 = dma.done.wait [#allocation3], 512  }
  0x24   :  { %549 = vsyncadd [#allocation3], 4294966784 }
  0x25   :  { %550 = dma.done.wait [#allocation6], 512  }
  0x26   :  { %551 = vsyncadd [#allocation6], 4294966784  ;;  %v47_v0 = vld [vmem:[%s666_s0] sm:$0xff]  ;;  %v48_v1 = vld [vmem:[%s666_s0 + $0x8] sm:$0xff]  ;;  %vm81_vm0 = vcmask 261120   ;;  %vm195_vm1 = vcmask 523264  }
  0x27   :  { %v49_v2 = vld [vmem:[%s666_s0 + $0x10] sm:$0xff]  ;;  %v51_v3 = vpack.c.bf16 %v48_v1, %v47_v0  ;;  %v50_v4 = vld [vmem:[%s666_s0 + $0x18] sm:$0xff]  ;;  %v470_v6 = vld [vmem:[%s667_s1] sm:$0xff]   ;;  %vm366_vm2 = vcmask 1048064  }
  0x28   :  { %v52_v5 = vpack.c.bf16 %v50_v4, %v49_v2  ;;  %431 = vmatprep.mubr.msk.bf16.mxu0 %vm81_vm0, %v470_v6  ;;  %v471_v7 = vld [vmem:[%s667_s1 + $0x8] sm:$0xff]   ;;  %v472_v8 = vld [vmem:[%s667_s1 + $0x10] sm:$0xff]   ;;  %v474_v9 = vld [vmem:[#allocation2] sm:$0xff]  }
  0x29   :  { %427 = vmatprep.subr.bf16.mxu0 %v51_v3  ;;  %v475_v10 = vld [vmem:[#allocation2 + $0x8] sm:$0xff]   ;;  %439 = vmatprep.subr.bf16.mxu1 %v474_v9  ;;  %v476_v11 = vld [vmem:[#allocation5] sm:$0xff]   ;;  %v477_v12 = vld [vmem:[#allocation2 + $0x10] sm:$0xff]  }
  0x2a   :  { %428 = vmatpush3.bf16.msra.mxu0 %v51_v3  ;;  %440 = vmatpush3.bf16.msra.mxu1 %v474_v9  ;;  %v473_v13 = vld [vmem:[%s667_s1 + $0x18] sm:$0xff]   ;;  %v478_v14 = vld [vmem:[#allocation5 + $0x8] sm:$0xff]   ;;  %v480_v16 = vld [vmem:[#allocation5 + $0x10] sm:$0xff]   ;;  %s558_s1 = smov [#allocation7]  }
  0x2b   :  { %429 = vmatprep.subr.bf16.mxu0 %v52_v5  ;;  %441 = vmatprep.subr.bf16.mxu1 %v475_v10  ;;  %v479_v15 = vld [vmem:[#allocation2 + $0x18] sm:$0xff]   ;;  %s376_s29 = sshll.u32 %s558_s1, 4  ;;  %s377_s29 = int_to_ptr.vmem [resolvable:$true] %s376_s29 }
  0x2c   :  { %v481_v17 = vld [vmem:[#allocation5 + $0x18] sm:$0xff]   ;;  %s526_s30 = scalar_lea.vmem %s377_s29, 512  ;;  %p531_p3 = scmp.lt.s32.totalorder %s377_s29, %s377_s29 }
  0x2d   :  { %p527_p2 = scmp.ne.s32.totalorder %s377_s29, %s526_s30  ;;  %p532_p4 = scmp.lt.s32.totalorder %s526_s30, %s526_s30 }
  0x2e   :  { %430 = vmatpush3.bf16.msra.mxu0 %v52_v5  ;;  %442 = vmatpush3.bf16.msra.mxu1 %v475_v10 }
  0x2f   :  { %451 = vmatprep.subr.bf16.mxu0 %v476_v11  ;;  %443 = vmatprep.subr.bf16.mxu1 %v477_v12  ;;  %p533_p5 = por %p532_p4, %p531_p3 }
  0x31   :  { %432 = vmatmul.mubr.msk.bf16.vlgmr.msra.gmra.mrb[0].mxu0 %vm81_vm0, %v471_v7  ;;  %p534_p6 = pnand %p533_p5, %p527_p2 }
  0x32   :  { %435 = vmatprep.mubr.msk.bf16.mxu0 %vm81_vm0, %v472_v8  ;;  %452 = vmatpush3.bf16.msra.mxu0 %v476_v11 }
  0x33   :  { %444 = vmatpush3.bf16.msra.mxu1 %v477_v12  ;;  %453 = vmatprep.subr.bf16.mxu0 %v478_v14 }
  0x34   :  { %445 = vmatprep.subr.bf16.mxu1 %v479_v15 }
  0x36   :  { %454 = vmatpush3.bf16.msra.mxu0 %v478_v14 }
  0x37   :  { %446 = vmatpush3.bf16.msra.mxu1 %v479_v15  ;;  %455 = vmatprep.subr.bf16.mxu0 %v480_v16 }
  0x39   :  { %436 = vmatmul.mubr.msk.bf16.gmra.mrb[4].mxu0 %vm81_vm0, %v473_v13 }
  0x3a   :  { %456 = vmatpush3.bf16.msra.mxu0 %v480_v16 }
  0x3b   :  { %457 = vmatprep.subr.bf16.mxu0 %v481_v17 }
  0x3e   :  { %458 = vmatpush3.bf16.msra.mxu0 %v481_v17 }
 0x104   :  { %v433_v18 = vpop.f32.mrb[0].mxu0 }
 0x105   :  { %v128_v19 = vpop.f32.mrb[1].mxu0 }
 0x106   :  { %v434_v20 = vpop.f32.mrb[2].mxu0 }
 0x107   :  { %v160_v21 = vpack.c.bf16 %v434_v20, %v433_v18  ;;  %v131_v22 = vpop.f32.mrb[3].mxu0 }
 0x108   :  { %v159_v23 = vpack.c.bf16 %v131_v22, %v128_v19 }
 0x10a   :  { %447 = vmatprep.mubr.msk.bf16.mxu1 %vm195_vm1, %v159_v23 }
 0x10b   :  { %448 = vmatmul.mubr.msk.bf16.vlgmr.msra.gmra.mrb[0].mxu1 %vm195_vm1, %v160_v21 }
 0x10c   :  { %v437_v24 = vpop.f32.mrb[4].mxu0 }
 0x10d   :  { %v144_v25 = vpop.f32.mrb[5].mxu0 }
 0x10e   :  { %v438_v26 = vpop.f32.mrb[6].mxu0 }
 0x10f   :  { %v162_v27 = vpack.c.bf16 %v438_v26, %v437_v24  ;;  %v147_v28 = vpop.f32.mrb[7].mxu0 }
 0x110   :  { %v161_v29 = vpack.c.bf16 %v147_v28, %v144_v25 }
 0x112   :  { %459 = vmatprep.mubr.msk.bf16.mxu0 %vm195_vm1, %v161_v29 }
 0x113   :  { %460 = vmatmul.mubr.msk.bf16.vlgmr.msra.gmra.mrb[8].mxu0 %vm195_vm1, %v162_v27 }
 0x1de   :  { %v449_v30 = vpop.f32.mrb[0].mxu1 }
 0x1df   :  { %v340_v31 = vmul.f32 0.00014568765, %v449_v30  ;;  %v236_v32 = vpop.f32.mrb[1].mxu1 }
 0x1e0   :  { %v338_v33 = vmul.f32 0.00014568765, %v236_v32  ;;  %v450_v34 = vpop.f32.mrb[2].mxu1 }
 0x1e1   :  { %344 = vst.msk [vmem:[#allocation7 + $0x10] sm:$0xff] %vm195_vm1, %v340_v31  ;;  %v341_v35 = vmul.f32 0.00014568765, %v450_v34  ;;  %v239_v36 = vpop.f32.mrb[3].mxu1 }
 0x1e2   :  { %342 = vst.msk [vmem:[#allocation7] sm:$0xff] %vm195_vm1, %v338_v33  ;;  %v339_v37 = vmul.f32 0.00014568765, %v239_v36 }
 0x1e3   :  { %345 = vst.msk [vmem:[#allocation7 + $0x18] sm:$0xff] %vm195_vm1, %v341_v35 }
 0x1e4   :  { %343 = vst.msk [vmem:[#allocation7 + $0x8] sm:$0xff] %vm195_vm1, %v339_v37 }
 0x1e6   :  { %v461_v38 = vpop.f32.mrb[8].mxu0 }
 0x1e7   :  { %v323_v39 = vpop.f32.mrb[9].mxu0  ;;  %v348_v40 = vmul.f32 0.00014568765, %v461_v38 }
 0x1e8   :  { %v462_v41 = vpop.f32.mrb[10].mxu0  ;;  %v346_v42 = vmul.f32 0.00014568765, %v323_v39 }
 0x1e9   :  { %358 = vrot.lane.b32.xlu1 %v348_v40, %s555_s25  ;;  %v326_v43 = vpop.f32.mrb[11].mxu0  ;;  %v349_v44 = vmul.f32 0.00014568765, %v462_v41 }
 0x1ea   :  { %354 = vrot.lane.b32.xlu0 %v346_v42, %s555_s25  ;;  %v347_v45 = vmul.f32 0.00014568765, %v326_v43 }
 0x1ed   :  { %360 = vrot.lane.b32.xlu1 %v349_v44, %s555_s25 }
 0x1ee   :  { %356 = vrot.lane.b32.xlu0 %v347_v45, %s555_s25 }
 0x25b   :  { %v359_v46 = vpop.permute.xlu1 %358 }
 0x25c   :  { %369 = vst.msk [vmem:[#allocation7 + $0x10] sm:$0xff] %vm366_vm2, %v359_v46  ;;  %v355_v47 = vpop.permute.xlu0 %354 }
 0x25d   :  { %367 = vst.msk [vmem:[#allocation7] sm:$0xff] %vm366_vm2, %v355_v47 }
 0x25f   :  { %v361_v48 = vpop.permute.xlu1 %360 }
 0x260   :  { %370 = vst.msk [vmem:[#allocation7 + $0x18] sm:$0xff] %vm366_vm2, %v361_v48  ;;  %v357_v49 = vpop.permute.xlu0 %356 }
 0x261   :  { %368 = vst.msk [vmem:[#allocation7 + $0x8] sm:$0xff] %vm366_vm2, %v357_v49 }
 0x262   :  { %537 = shalt.err (!%p534_p6)
}
 0x263   :  { %s538_s6 = scalar_lea.hbm %s670_s4, 512 }
 0x264   :  { %p539_p7 = scmp.ne.s32.totalorder %s670_s4, %s538_s6  ;;  %p542_p8 = scmp.lt.u32.totalorder %s538_s6, %s670_s4 }
 0x266   :  { %p544_p9 = pnand %p542_p8, %p539_p7 }
 0x268   :  { %547 = shalt.err (!%p544_p9)
}
 0x269   :  { %s559_s11 = smov 128   ;;  %s560_s12 = smov 8  }
 0x26a   :  { %382 = dma.vmem_to_hbm [thread:$0]  %s377_s29, 512, %s670_s4, [#allocation4], %s559_s11, %s559_s11, %s560_s12  }
 0x26b   :  { %552 = dma.done.wait [#allocation4], 512  }
 0x26c   :  { %553 = vsyncadd [#allocation4], 4294966784 }
 0x26d   :  { %386 = vsyncpa [#allocation3], 1 }
 0x26e   :  { %387 = vsyncpa [#allocation6], 1 }
 0x26f   :  { %388 = vsyncpa [#allocation4], 1 }

</bundles_post_ra>
